<compile_context>
chip_gen: v6e
topology: v6e:2x2x1
jax: 0.10.0
libtpu: 0.0.40
codegen_flags: <defaults>
</compile_context>

<pallas_src>
import jax
import jax.numpy as jnp
from jax.experimental import pallas as pl
from jax.experimental.pallas import tpu as pltpu


def _la_kernel(x_ref, w_ref, b_ref, o_ref):
    # x_ref: (L, block_n, H)   w_ref: (L, H, H)   b_ref: (1, H)   o_ref: (block_n, H)
    num_layers = x_ref.shape[0]
    b = b_ref[...]  # hoist the bias load/broadcast out of the layer loop
    acc = jnp.zeros(o_ref.shape, jnp.float32)
    # L is small and static -> unrolled per-layer MXU accumulation, no transpose.
    for l in range(num_layers):
        xl = jnp.maximum(x_ref[l], 0.0)  # per-layer ReLU == ReLU of the cat slice
        acc = acc + jnp.dot(xl, w_ref[l], preferred_element_type=jnp.float32)
    o_ref[...] = (acc + b).astype(o_ref.dtype)
    # NOTE: H=32 means the output store is lane-masked (sub-128 lanes); if a
    # downstream op consumes [N, H], fuse it here so the narrow store never
    # hits HBM.


def _pick_block_n(n_rows):
    """Large tiles to amortize per-step overhead, but >=2 grid steps when
    possible so v7x's two TensorCores each get a shard."""
    block_n = min(512, n_rows)
    while block_n > 8 and n_rows // block_n < 2 and n_rows % (block_n // 2) == 0:
        block_n //= 2
    return block_n


def la_op_forward(x_stack, weight, bias, *, block_n=None):
    """x_stack: [L, N, H]. weight: [L*H, H] (row-major over layers). bias: [H].

    Returns [N, H] = relu(concat_l x_stack[l]) @ weight + bias.
    """
    L, N, H = x_stack.shape
    assert weight.shape == (L * H, H)
    if block_n is None:
        block_n = _pick_block_n(N)
    assert N % block_n == 0, "N must be divisible by block_n"

    # Split the [L*H, H] weight into per-layer [H, H] blocks (tiny reshape).
    w3 = weight.reshape(L, H, H)
    b2d = bias.reshape(1, H)

    grid = (N // block_n,)
    bytes_accessed = (
        x_stack.size * x_stack.dtype.itemsize
        + w3.size * w3.dtype.itemsize
        + b2d.size * b2d.dtype.itemsize
        + N * H * x_stack.dtype.itemsize
    )
    cost = pl.CostEstimate(
        flops=2 * N * L * H * H,
        transcendentals=0,
        bytes_accessed=bytes_accessed,
    )

    return pl.pallas_call(
        _la_kernel,
        out_shape=jax.ShapeDtypeStruct((N, H), x_stack.dtype),
        grid_spec=pltpu.PrefetchScalarGridSpec(
            num_scalar_prefetch=0,
            grid=grid,
            in_specs=[
                # x tile: all layers for a block of rows, no relayout needed.
                pl.BlockSpec((L, block_n, H), lambda i: (0, i, 0)),
                # per-layer weights, resident across all grid steps.
                pl.BlockSpec((L, H, H), lambda i: (0, 0, 0)),
                # bias, resident.
                pl.BlockSpec((1, H), lambda i: (0, 0)),
            ],
            out_specs=pl.BlockSpec((block_n, H), lambda i: (i, 0)),
        ),
        compiler_params=pltpu.CompilerParams(
            dimension_semantics=("parallel",),
        ),
        cost_estimate=cost,
    )(x_stack, w3, b2d)


if __name__ == "__main__":
    # Small shapes consistent with the module: num_layers=3, N=128 nodes, hidden=32.
    num_layers, N, hidden = 3, 128, 32

    key = jax.random.PRNGKey(0)
    kx, kw, kb = jax.random.split(key, 3)

    # Input: stack of per-layer node embeddings, [L, N, H].
    x_stack = jax.random.normal(kx, (num_layers, N, hidden), dtype=jnp.float32)

    # Deterministic Linear(L*H -> H) params (synthetic, not a checkpoint).
    fan_in = num_layers * hidden
    bound = 1.0 / jnp.sqrt(fan_in)
    weight = jax.random.uniform(kw, (fan_in, hidden), jnp.float32, -bound, bound)
    bias = jax.random.uniform(kb, (hidden,), jnp.float32, -bound, bound)

    out = la_op_forward(x_stack, weight, bias)
    out = jax.block_until_ready(out)

    # Pure-JAX reference check of the fused kernel (original cat formulation).
    x_cat = jnp.transpose(x_stack, (1, 0, 2)).reshape(N, num_layers * hidden)
    ref = jnp.maximum(x_cat, 0.0) @ weight + bias
    assert out.shape == (N, hidden)
    assert jnp.allclose(out, ref, atol=1e-5, rtol=1e-5)

    # TODO(synk): 'l_lstm' primitive (bi-LSTM attention over layers) has no clean
    # single-kernel Pallas equivalent here; only the 'cat' aggregator is implemented.
    print("KERNEL_OK")
</pallas_src>

<mosaic_0001>
module attributes {stable_mosaic.version = 11 : i64} {
  func.func @_la_kernel(%arg0: i32, %arg1: memref<3x64x32xf32, #tpu.memory_space<vmem>>, %arg2: memref<3x32x32xf32, #tpu.memory_space<vmem>>, %arg3: memref<1x32xf32, #tpu.memory_space<vmem>>, %arg4: memref<64x32xf32, #tpu.memory_space<vmem>>) attributes {dimension_semantics = [#tpu.dimension_semantics<parallel>], iteration_bounds = array<i64: 2>, scalar_prefetch = 0 : i64, scratch_operands = 0 : i64, tpu.core_type = #tpu.core_type<tc>, window_params = [{transform_indices = @transform_0, window_bounds = array<i64: 3, 64, 32>}, {pipeline_mode = #tpu.pipeline_mode<synchronous>, transform_indices = @transform_1, window_bounds = array<i64: 3, 32, 32>}, {pipeline_mode = #tpu.pipeline_mode<synchronous>, transform_indices = @transform_2, window_bounds = array<i64: 1, 32>}, {transform_indices = @transform_3, window_bounds = array<i64: 64, 32>}]} {
    %c0 = arith.constant 0 : index
    %c0_0 = arith.constant 0 : index
    %0 = vector.load %arg3[%c0, %c0_0] : memref<1x32xf32, #tpu.memory_space<vmem>>, vector<1x32xf32>
    %cst = arith.constant 0.000000e+00 : f32
    %1 = vector.broadcast %cst : f32 to vector<64x32xf32>
    %c0_1 = arith.constant 0 : index
    %c0_2 = arith.constant 0 : index
    %c0_3 = arith.constant 0 : index
    %2 = vector.load %arg1[%c0_1, %c0_2, %c0_3] : memref<3x64x32xf32, #tpu.memory_space<vmem>>, vector<1x64x32xf32>
    %3 = vector.shape_cast %2 : vector<1x64x32xf32> to vector<64x32xf32>
    %cst_4 = arith.constant 0.000000e+00 : f32
    %4 = vector.broadcast %cst_4 : f32 to vector<64x32xf32>
    %5 = arith.maximumf %3, %4 : vector<64x32xf32>
    %c0_5 = arith.constant 0 : index
    %c0_6 = arith.constant 0 : index
    %c0_7 = arith.constant 0 : index
    %6 = vector.load %arg2[%c0_5, %c0_6, %c0_7] : memref<3x32x32xf32, #tpu.memory_space<vmem>>, vector<1x32x32xf32>
    %7 = vector.shape_cast %6 : vector<1x32x32xf32> to vector<32x32xf32>
    %cst_8 = arith.constant dense<0.000000e+00> : vector<64x32xf32>
    %8 = tpu.matmul %5, %7, %cst_8 {dimension_numbers = #tpu.dot_dimension_numbers<[1], [0], [0], [1], [0, 0, 1, 1], [], []>} : vector<64x32xf32>, vector<32x32xf32>, vector<64x32xf32> -> vector<64x32xf32>
    %9 = arith.addf %1, %8 : vector<64x32xf32>
    %c1 = arith.constant 1 : index
    %c0_9 = arith.constant 0 : index
    %c0_10 = arith.constant 0 : index
    %10 = vector.load %arg1[%c1, %c0_9, %c0_10] : memref<3x64x32xf32, #tpu.memory_space<vmem>>, vector<1x64x32xf32>
    %11 = vector.shape_cast %10 : vector<1x64x32xf32> to vector<64x32xf32>
    %cst_11 = arith.constant 0.000000e+00 : f32
    %12 = vector.broadcast %cst_11 : f32 to vector<64x32xf32>
    %13 = arith.maximumf %11, %12 : vector<64x32xf32>
    %c1_12 = arith.constant 1 : index
    %c0_13 = arith.constant 0 : index
    %c0_14 = arith.constant 0 : index
    %14 = vector.load %arg2[%c1_12, %c0_13, %c0_14] : memref<3x32x32xf32, #tpu.memory_space<vmem>>, vector<1x32x32xf32>
    %15 = vector.shape_cast %14 : vector<1x32x32xf32> to vector<32x32xf32>
    %cst_15 = arith.constant dense<0.000000e+00> : vector<64x32xf32>
    %16 = tpu.matmul %13, %15, %cst_15 {dimension_numbers = #tpu.dot_dimension_numbers<[1], [0], [0], [1], [0, 0, 1, 1], [], []>} : vector<64x32xf32>, vector<32x32xf32>, vector<64x32xf32> -> vector<64x32xf32>
    %17 = arith.addf %9, %16 : vector<64x32xf32>
    %c2 = arith.constant 2 : index
    %c0_16 = arith.constant 0 : index
    %c0_17 = arith.constant 0 : index
    %18 = vector.load %arg1[%c2, %c0_16, %c0_17] : memref<3x64x32xf32, #tpu.memory_space<vmem>>, vector<1x64x32xf32>
    %19 = vector.shape_cast %18 : vector<1x64x32xf32> to vector<64x32xf32>
    %cst_18 = arith.constant 0.000000e+00 : f32
    %20 = vector.broadcast %cst_18 : f32 to vector<64x32xf32>
    %21 = arith.maximumf %19, %20 : vector<64x32xf32>
    %c2_19 = arith.constant 2 : index
    %c0_20 = arith.constant 0 : index
    %c0_21 = arith.constant 0 : index
    %22 = vector.load %arg2[%c2_19, %c0_20, %c0_21] : memref<3x32x32xf32, #tpu.memory_space<vmem>>, vector<1x32x32xf32>
    %23 = vector.shape_cast %22 : vector<1x32x32xf32> to vector<32x32xf32>
    %cst_22 = arith.constant dense<0.000000e+00> : vector<64x32xf32>
    %24 = tpu.matmul %21, %23, %cst_22 {dimension_numbers = #tpu.dot_dimension_numbers<[1], [0], [0], [1], [0, 0, 1, 1], [], []>} : vector<64x32xf32>, vector<32x32xf32>, vector<64x32xf32> -> vector<64x32xf32>
    %25 = arith.addf %17, %24 : vector<64x32xf32>
    %26 = vector.broadcast %0 : vector<1x32xf32> to vector<64x32xf32>
    %27 = arith.addf %25, %26 : vector<64x32xf32>
    %c0_23 = arith.constant 0 : index
    %c0_24 = arith.constant 0 : index
    %28 = vector.load %arg4[%c0_23, %c0_24] : memref<64x32xf32, #tpu.memory_space<vmem>>, vector<64x32xf32>
    tpu.vector_store %arg4[%c0_23, %c0_24], %27 {strides = array<i32>} : memref<64x32xf32, #tpu.memory_space<vmem>>, vector<64x32xf32>,
    return
  }
  func.func @transform_0(%arg0: i32) -> (i32, i32, i32) {
    %c0_i32 = arith.constant 0 : i32
    %c0_i32_0 = arith.constant 0 : i32
    %c0_i32_1 = arith.constant 0 : i32
    return %c0_i32, %arg0, %c0_i32_0 : i32, i32, i32
  }
  func.func @transform_1(%arg0: i32) -> (i32, i32, i32) {
    %c0_i32 = arith.constant 0 : i32
    %c0_i32_0 = arith.constant 0 : i32
    %c0_i32_1 = arith.constant 0 : i32
    %c0_i32_2 = arith.constant 0 : i32
    return %c0_i32, %c0_i32_0, %c0_i32_1 : i32, i32, i32
  }
  func.func @transform_2(%arg0: i32) -> (i32, i32) {
    %c0_i32 = arith.constant 0 : i32
    %c0_i32_0 = arith.constant 0 : i32
    %c0_i32_1 = arith.constant 0 : i32
    return %c0_i32, %c0_i32_0 : i32, i32
  }
  func.func @transform_3(%arg0: i32) -> (i32, i32) {
    %c0_i32 = arith.constant 0 : i32
    %c0_i32_0 = arith.constant 0 : i32
    return %arg0, %c0_i32 : i32, i32
  }
}

</mosaic_0001>

<bundles_post_ra>
// kernel: tpu_custom_call.1
= control target key start
LH: loop header
LB: loop body
LE: loop exit
PB: predicated region body
PF: predicated region fallthrough
CT: control target
= control target key end

     0   :  { %s1081_s12 = smov 0   ;;  %s1083_s13 = smov 0   ;;  %s1292_s0 = inlined_call_operand.vmem [shape: f32[3,128,32], index: 0, kind: input, shape index: {}]   ;;  %s1293_s1 = inlined_call_operand.vmem [shape: f32[3,32,32], index: 1, kind: input, shape index: {}]   ;;  %s1294_s2 = inlined_call_operand.vmem [shape: f32[1,32], index: 2, kind: input, shape index: {}]   ;;  %s1295_s3 = inlined_call_operand.vmem [shape: f32[128,32], index: 3, kind: output, shape index: {}]  }
   0x1   :  { %s1085_s14 = smov 0  }
   0x2 LB: > { %s846_s15 = sadd.s32 4294967295, %s1059_s14   ;;  %s1098_s16 = sadd.s32 1, %s1059_s14   ;;  %s1059_s14 = sphi %s1085_s14, %s1298_s14   ;;  %s1055_s13 = sphi %s1083_s13, %s1297_s13   ;;  %s1051_s12 = sphi %s1081_s12, %s1296_s12  }
   0x3   : > { %s17_s17 = ssub.s32 %s1059_s14, %s1098_s16  ;;  %s20_s18 = sadd.s32 1, %s1055_s13 }
   0x4   : > { %p18_p0 = scmp.eq.s32.totalorder %s17_s17, 0  ;;  %p27_p1 = scmp.ne.s32.totalorder %s1055_s13, %s1051_s12 }
   0x5   : > { %p28_p2 = scmp.eq.s32.totalorder %s1059_s14, 0  ;;  %p849_p4 = scmp.ge.s32.totalorder %s1059_s14, 2 }
   0x6   : > { %s1107_s19 = scalar_select %p18_p0, %s1055_s13, %s20_s18  }
   0x7   : > { %p29_p3 = por %p28_p2, %p27_p1  ;;  %127 = sbr.rel (%p849_p4) target bundleno = 29 (0x1d), region = 24 }
   0xc   : > { %130 = sbr.rel (!%p29_p3) target bundleno = 29 (0x1d), region = 28  ;;  %s132_s20 = sand.u32 (%p29_p3), 1, %s1055_s13  }
   0xd   : > { %s906_s21 = sshll.u32 (%p29_p3), %s1059_s14, 6  ;;  %s1011_s22 = smul.u32 (%p29_p3), 192, %s132_s20 }
   0xe   : > { %s1115_s25 = scalar_lea.vmem (%p29_p3), %s1292_s0, %s906_s21 }
   0xf   : > { %v212_v0 = vld [vmem:[%s1115_s25] sm:$0xff] (%p29_p3)  ;;  %v214_v1 = vld [vmem:[%s1115_s25 + $0x8] sm:$0xff] (%p29_p3)  ;;  %v216_v2 = vld [vmem:[%s1115_s25 + $0x10] sm:$0xff] (%p29_p3)  ;;  %s1123_s26 = scalar_lea.vmem (%p29_p3), [#allocation2], %s1011_s22 }
  0x10   : > { %v218_v3 = vld [vmem:[%s1115_s25 + $0x18] sm:$0xff] (%p29_p3)  ;;  %v220_v4 = vld [vmem:[%s1115_s25 + $0x20] sm:$0xff] (%p29_p3)  ;;  %v222_v5 = vld [vmem:[%s1115_s25 + $0x28] sm:$0xff] (%p29_p3)  ;;  %213 = vst [vmem:[%s1123_s26] sm:$0xff] (%p29_p3), %v212_v0 }
  0x11   : > { %215 = vst [vmem:[%s1123_s26 + $0x8] sm:$0xff] %v214_v1  ;;  %217 = vst [vmem:[%s1123_s26 + $0x10] sm:$0xff] %v216_v2  ;;  %v224_v6 = vld [vmem:[%s1115_s25 + $0x30] sm:$0xff]  ;;  %v226_v7 = vld [vmem:[%s1115_s25 + $0x38] sm:$0xff] }
  0x12   : > { %219 = vst [vmem:[%s1123_s26 + $0x18] sm:$0xff] %v218_v3  ;;  %221 = vst [vmem:[%s1123_s26 + $0x20] sm:$0xff] %v220_v4  ;;  %v228_v8 = vld [vmem:[%s1115_s25 + $0x80] sm:$0xff]  ;;  %v230_v9 = vld [vmem:[%s1115_s25 + $0x88] sm:$0xff] }
  0x13   : > { %223 = vst [vmem:[%s1123_s26 + $0x28] sm:$0xff] %v222_v5  ;;  %225 = vst [vmem:[%s1123_s26 + $0x30] sm:$0xff] %v224_v6  ;;  %v232_v10 = vld [vmem:[%s1115_s25 + $0x90] sm:$0xff]  ;;  %v234_v11 = vld [vmem:[%s1115_s25 + $0x98] sm:$0xff] }
  0x14   : > { %227 = vst [vmem:[%s1123_s26 + $0x38] sm:$0xff] %v226_v7  ;;  %229 = vst [vmem:[%s1123_s26 + $0x40] sm:$0xff] %v228_v8  ;;  %v236_v12 = vld [vmem:[%s1115_s25 + $0xa0] sm:$0xff]  ;;  %v238_v13 = vld [vmem:[%s1115_s25 + $0xa8] sm:$0xff] }
  0x15   : > { %231 = vst [vmem:[%s1123_s26 + $0x48] sm:$0xff] %v230_v9  ;;  %233 = vst [vmem:[%s1123_s26 + $0x50] sm:$0xff] %v232_v10  ;;  %v240_v14 = vld [vmem:[%s1115_s25 + $0xb0] sm:$0xff]  ;;  %v242_v15 = vld [vmem:[%s1115_s25 + $0xb8] sm:$0xff] }
  0x16   : > { %235 = vst [vmem:[%s1123_s26 + $0x58] sm:$0xff] %v234_v11  ;;  %237 = vst [vmem:[%s1123_s26 + $0x60] sm:$0xff] %v236_v12  ;;  %v244_v16 = vld [vmem:[%s1115_s25 + $0x100] sm:$0xff]  ;;  %v246_v17 = vld [vmem:[%s1115_s25 + $0x108] sm:$0xff] }
  0x17   : > { %239 = vst [vmem:[%s1123_s26 + $0x68] sm:$0xff] %v238_v13  ;;  %241 = vst [vmem:[%s1123_s26 + $0x70] sm:$0xff] %v240_v14  ;;  %v248_v18 = vld [vmem:[%s1115_s25 + $0x110] sm:$0xff]  ;;  %v250_v19 = vld [vmem:[%s1115_s25 + $0x118] sm:$0xff] }
  0x18   : > { %243 = vst [vmem:[%s1123_s26 + $0x78] sm:$0xff] %v242_v15  ;;  %245 = vst [vmem:[%s1123_s26 + $0x80] sm:$0xff] %v244_v16  ;;  %v252_v20 = vld [vmem:[%s1115_s25 + $0x120] sm:$0xff]  ;;  %v254_v21 = vld [vmem:[%s1115_s25 + $0x128] sm:$0xff] }
  0x19   : > { %247 = vst [vmem:[%s1123_s26 + $0x88] sm:$0xff] %v246_v17  ;;  %249 = vst [vmem:[%s1123_s26 + $0x90] sm:$0xff] %v248_v18  ;;  %v256_v22 = vld [vmem:[%s1115_s25 + $0x130] sm:$0xff]  ;;  %v258_v23 = vld [vmem:[%s1115_s25 + $0x138] sm:$0xff] }
  0x1a   : > { %251 = vst [vmem:[%s1123_s26 + $0x98] sm:$0xff] %v250_v19  ;;  %253 = vst [vmem:[%s1123_s26 + $0xa0] sm:$0xff] %v252_v20 }
  0x1b   : > { %255 = vst [vmem:[%s1123_s26 + $0xa8] sm:$0xff] %v254_v21  ;;  %257 = vst [vmem:[%s1123_s26 + $0xb0] sm:$0xff] %v256_v22 }
  0x1c   : > { %259 = vst [vmem:[%s1123_s26 + $0xb8] sm:$0xff] %v258_v23 }
  0x1d PF: > { %p852_p5 = scmp.ge.s32.totalorder %s1059_s14, 1  ;;  %p264_p6 = scmp.lt.s32.totalorder %s1059_s14, 3 }
  0x1f   : > { %p265_p7 = pnand %p852_p5, %p264_p6 }
  0x20   : > { %s271_s4 = sand.u32 (!%p265_p7), 1, %s1051_s12  }
  0x21   : > { %268 = sbr.rel (%p265_p7) target bundleno = 273 (0x111), region = 66 }
  0x22   : > { %s1012_s5 = smul.u32 (!%p265_p7), 192, %s271_s4 }
  0x24   : > { %s1182_s10 = scalar_lea.vmem (!%p265_p7), [#allocation2], %s1012_s5  ;;  %s853_s5 = sshll.u32 (!%p265_p7), %s846_s15, 3 }
  0x25   : > { %p296_p8 = scmp.lt.s32.totalorder (!%p265_p7), %s853_s5, 15 }
  0x26   : > { %v866_v24 = vld [vmem:[%s1293_s1 + $0x38] sm:$0xff]  ;;  %v865_v25 = vld [vmem:[%s1293_s1 + $0x30] sm:$0xff]  ;;  %v864_v26 = vld [vmem:[%s1293_s1 + $0x28] sm:$0xff]  ;;  %vm344_vm0 = vcmask 261120  }
  0x27   : > { %1003 = vmatprep.subr.mxu1 %v866_v24  ;;  %943 = vmatprep.subr.mxu0 %v866_v24  ;;  %v863_v27 = vld [vmem:[%s1293_s1 + $0x20] sm:$0xff]  ;;  %v860_v30 = vld [vmem:[%s1182_s10 + $0x68] sm:$0xff]  ;;  %v861_v35 = vld [vmem:[%s1182_s10 + $0x70] sm:$0xff]  ;;  %s1300_s5 = smov (!%p296_p8, %s853_s5), 15 }
  0x28   : > { %1007 = vmatpush3.msra.mxu1 %v866_v24  ;;  %944 = vmatpush3.msra.mxu0 %v866_v24  ;;  %v859_v28 = vld [vmem:[%s1182_s10 + $0x60] sm:$0xff]  ;;  %v856_v33 = vld [vmem:[%s1182_s10 + $0x48] sm:$0xff]  ;;  %v336_v34 = vmax.f32 %v860_v30, 0.0  ;;  %v321_v36 = vld [vmem:[%s1293_s1 + $0x18] sm:$0xff]  ;;  %v337_v42 = vmax.f32 %v861_v35, 0.0  ;;  %s854_s6 = sshll.u32 %s1300_s5, 3 }
  0x29   : > { %1004 = vmatprep.subr.mxu1 %v865_v25  ;;  %945 = vmatprep.subr.mxu0 %v865_v25  ;;  %v855_v29 = vld [vmem:[%s1182_s10 + $0x40] sm:$0xff]  ;;  %v335_v31 = vmax.f32 %v859_v28, 0.0  ;;  %v332_v37 = vmax.f32 %v856_v33, 0.0  ;;  %v857_v38 = vld [vmem:[%s1182_s10 + $0x50] sm:$0xff]  ;;  %v862_v39 = vld [vmem:[%s1182_s10 + $0x78] sm:$0xff]  ;;  %s1264_s9 = scalar_lea.vmem %s1295_s3, %s854_s6 }
  0x2a   : > { %1008 = vmatpush3.msra.mxu1 %v865_v25  ;;  %946 = vmatpush3.msra.mxu0 %v865_v25  ;;  %v331_v32 = vmax.f32 %v855_v29, 0.0  ;;  %v894_v40 = vld [vmem:[%s1293_s1 + $0x58] sm:$0xff]  ;;  %v320_v41 = vld [vmem:[%s1293_s1 + $0x10] sm:$0xff]  ;;  %v333_v45 = vmax.f32 %v857_v38, 0.0  ;;  %v338_v46 = vmax.f32 %v862_v39, 0.0  ;;  %v319_v47 = vld [vmem:[%s1293_s1 + $0x8] sm:$0xff] }
  0x2b   : > { %1005 = vmatprep.subr.mxu1 %v864_v26  ;;  %947 = vmatprep.subr.mxu0 %v864_v26  ;;  %v858_v43 = vld [vmem:[%s1182_s10 + $0x58] sm:$0xff]  ;;  %v893_v44 = vld [vmem:[%s1293_s1 + $0x50] sm:$0xff]  ;;  %v302_v49 = vld [vmem:[%s1182_s10] sm:$0xff] }
  0x2c   : > { %1009 = vmatpush3.msra.mxu1 %v864_v26  ;;  %948 = vmatpush3.msra.mxu0 %v864_v26  ;;  %v334_v48 = vmax.f32 %v858_v43, 0.0  ;;  %v892_v50 = vld [vmem:[%s1293_s1 + $0x48] sm:$0xff]  ;;  %v318_v52 = vld [vmem:[%s1293_s1] sm:$0xff]  ;;  %v304_v54 = vld [vmem:[%s1182_s10 + $0x10] sm:$0xff]  ;;  %v310_v55 = vmax.f32 %v302_v49, 0.0 }
  0x2d   : > { %1006 = vmatprep.subr.mxu1 %v863_v27  ;;  %949 = vmatprep.subr.mxu0 %v863_v27  ;;  %v303_v51 = vld [vmem:[%s1182_s10 + $0x8] sm:$0xff]  ;;  %v883_v53 = vld [vmem:[%s1182_s10 + $0x80] sm:$0xff]  ;;  %v885_v59 = vld [vmem:[%s1182_s10 + $0x90] sm:$0xff]  ;;  %v312_v61 = vmax.f32 %v304_v54, 0.0 }
  0x2e   : > { %1010 = vmatpush3.msra.mxu1 %v863_v27  ;;  %957 = vmatprep.mubr.msk.f32.mxu1 %vm344_vm0, %v335_v31  ;;  %v884_v56 = vld [vmem:[%s1182_s10 + $0x88] sm:$0xff]  ;;  %v891_v57 = vld [vmem:[%s1293_s1 + $0x40] sm:$0xff]  ;;  %v311_v58 = vmax.f32 %v303_v51, 0.0  ;;  %v612_v60 = vmax.f32 %v883_v53, 0.0  ;;  %v305_v62 = vld [vmem:[%s1182_s10 + $0x18] sm:$0xff]  ;;  %v614_v1 = vmax.f32 %v885_v59, 0.0 }
  0x2f   : > { %950 = vmatpush3.msra.mxu0 %v863_v27  ;;  %951 = vmatprep.mubr.msk.f32.mxu0 %vm344_vm0, %v331_v32  ;;  %v613_v63 = vmax.f32 %v884_v56, 0.0  ;;  %v306_v0 = vld [vmem:[%s1182_s10 + $0x20] sm:$0xff]  ;;  %v886_v2 = vld [vmem:[%s1182_s10 + $0x98] sm:$0xff]  ;;  %v313_v3 = vmax.f32 %v305_v62, 0.0  ;;  %v307_v6 = vld [vmem:[%s1182_s10 + $0x28] sm:$0xff] }
  0x30   : > { %958 = vmatmul.mubr.msk.f32.vlgmr.msra.gmra.mxu1 %vm344_vm0, %v336_v34  ;;  %963 = vmatprep.subr.mxu1 %v321_v36  ;;  %v887_v4 = vld [vmem:[%s1182_s10 + $0xa0] sm:$0xff]  ;;  %v314_v5 = vmax.f32 %v306_v0, 0.0  ;;  %v615_v7 = vmax.f32 %v886_v2, 0.0  ;;  %v308_v8 = vld [vmem:[%s1182_s10 + $0x30] sm:$0xff]  ;;  %v888_v10 = vld [vmem:[%s1182_s10 + $0xa8] sm:$0xff]  ;;  %v315_v11 = vmax.f32 %v307_v6, 0.0 }
  0x31   : > { %952 = vmatmul.mubr.msk.f32.vlgmr.msra.gmra.mxu0 %vm344_vm0, %v332_v37  ;;  %964 = vmatpush3.msra.mxu1 %v321_v36  ;;  %v616_v9 = vmax.f32 %v887_v4, 0.0  ;;  %v889_v12 = vld [vmem:[%s1182_s10 + $0xb0] sm:$0xff]  ;;  %v316_v13 = vmax.f32 %v308_v8, 0.0  ;;  %v309_v14 = vld [vmem:[%s1182_s10 + $0x38] sm:$0xff]  ;;  %v617_v15 = vmax.f32 %v888_v10, 0.0 }
  0x32   : > { %983 = vmatprep.subr.mxu0 %v894_v40  ;;  %965 = vmatprep.subr.mxu1 %v320_v41  ;;  %v618_v16 = vmax.f32 %v889_v12, 0.0  ;;  %v890_v17 = vld [vmem:[%s1182_s10 + $0xb8] sm:$0xff]  ;;  %v317_v18 = vmax.f32 %v309_v14, 0.0  ;;  %v903_v30 = vld [vmem:[%s1294_s2] ss:$0 sm:$0xff] }
  0x33   : > { %984 = vmatpush3.msra.mxu0 %v894_v40  ;;  %960 = vmatprep.mubr.msk.f32.mxu1 %vm344_vm0, %v337_v42  ;;  %v619_v19 = vmax.f32 %v890_v17, 0.0 }
  0x34   : > { %966 = vmatpush3.msra.mxu1 %v320_v41  ;;  %985 = vmatprep.subr.mxu0 %v893_v44 }
  0x35   : > { %954 = vmatprep.mubr.msk.f32.mxu0 %vm344_vm0, %v333_v45  ;;  %961 = vmatmul.mubr.msk.f32.gmra.mxu1 %vm344_vm0, %v338_v46 }
  0x36   : > { %967 = vmatprep.subr.mxu1 %v319_v47  ;;  %986 = vmatpush3.msra.mxu0 %v893_v44 }
  0x37   : > { %955 = vmatmul.mubr.msk.f32.gmra.mxu0 %vm344_vm0, %v334_v48  ;;  %968 = vmatpush3.msra.mxu1 %v319_v47 }
  0x38   : > { %987 = vmatprep.subr.mxu0 %v892_v50  ;;  %969 = vmatprep.subr.mxu1 %v318_v52 }
  0x39   : > { %988 = vmatpush3.msra.mxu0 %v892_v50  ;;  %970 = vmatpush3.msra.mxu1 %v318_v52 }
  0x3a   : > { %971 = vmatprep.mubr.msk.f32.mxu1 %vm344_vm0, %v310_v55  ;;  %989 = vmatprep.subr.mxu0 %v891_v57 }
  0x3b   : > { %972 = vmatmul.mubr.msk.f32.vlgmr.msra.gmra.mxu1 %vm344_vm0, %v311_v58  ;;  %990 = vmatpush3.msra.mxu0 %v891_v57 }
  0x3c   : > { %991 = vmatprep.mubr.msk.f32.mxu0 %vm344_vm0, %v612_v60  ;;  %974 = vmatprep.mubr.msk.f32.mxu1 %vm344_vm0, %v312_v61 }
  0x3d   : > { %992 = vmatmul.mubr.msk.f32.vlgmr.msra.gmra.mxu0 %vm344_vm0, %v613_v63 }
  0x3e   : > { %994 = vmatprep.mubr.msk.f32.mxu0 %vm344_vm0, %v614_v1 }
  0x3f   : > { %975 = vmatmul.mubr.msk.f32.gmra.mxu1 %vm344_vm0, %v313_v3 }
  0x40   : > { %977 = vmatprep.mubr.msk.f32.mxu1 %vm344_vm0, %v314_v5 }
  0x41   : > { %995 = vmatmul.mubr.msk.f32.gmra.mxu0 %vm344_vm0, %v615_v7 }
  0x42   : > { %997 = vmatprep.mubr.msk.f32.mxu0 %vm344_vm0, %v616_v9 }
  0x43   : > { %978 = vmatmul.mubr.msk.f32.gmra.mxu1 %vm344_vm0, %v315_v11 }
  0x44   : > { %980 = vmatprep.mubr.msk.f32.mxu1 %vm344_vm0, %v316_v13 }
  0x45   : > { %998 = vmatmul.mubr.msk.f32.gmra.mxu0 %vm344_vm0, %v617_v15 }
  0x46   : > { %1000 = vmatprep.mubr.msk.f32.mxu0 %vm344_vm0, %v618_v16 }
  0x47   : > { %981 = vmatmul.mubr.msk.f32.gmra.mxu1 %vm344_vm0, %v317_v18 }
  0x49   : > { %1001 = vmatmul.mubr.msk.f32.gmra.mxu0 %vm344_vm0, %v619_v19 }
  0xf0   : > { %v959_v20 = vpop.f32.mrf.mxu1 }
  0xf1   : > { %v953_v21 = vpop.f32.mrf.mxu0 }
  0xf2   : > { %v455_v22 = vpop.f32.mrf.mxu1 }
  0xf3   : > { %v435_v23 = vpop.f32.mrf.mxu0 }
  0xf5   : > { %v962_v24 = vpop.f32.mrf.mxu1 }
  0xf7   : > { %v956_v25 = vpop.f32.mrf.mxu0  ;;  %v465_v26 = vpop.f32.mrf.mxu1 }
  0xf9   : > { %v445_v27 = vpop.f32.mrf.mxu0 }
  0xfb   : > { %v973_v28 = vpop.f32.mrf.mxu1 }
  0xfc   : > { %v570_v29 = vadd.f32 %v973_v28, %v953_v21 }
  0xfd   : > { %v993_v31 = vpop.f32.mrf.mxu0  ;;  %v564_v32 = vpop.f32.mrf.mxu1 }
  0xfe   : > { %v755_v33 = vadd.f32 %v993_v31, %v570_v29  ;;  %v565_v34 = vadd.f32 %v564_v32, %v435_v23 }
  0xff   : > { %v715_v35 = vpop.f32.mrf.mxu0  ;;  %v976_v36 = vpop.f32.mrf.mxu1 }
 0x100   : > { %v769_v37 = vadd.f32 %v903_v30, %v755_v33  ;;  %v754_v38 = vadd.f32 %v715_v35, %v565_v34  ;;  %v580_v39 = vadd.f32 %v976_v36, %v956_v25 }
 0x101   : > { %v996_v40 = vpop.f32.mrf.mxu0  ;;  %v574_v41 = vpop.f32.mrf.mxu1 }
 0x102   : > { %777 = vst.msk [vmem:[%s1264_s9 + $0x8] sm:$0xff] %vm344_vm0, %v769_v37  ;;  %v768_v42 = vadd.f32 %v903_v30, %v754_v38  ;;  %v757_v43 = vadd.f32 %v996_v40, %v580_v39  ;;  %v575_v44 = vadd.f32 %v574_v41, %v445_v27 }
 0x103   : > { %v725_v45 = vpop.f32.mrf.mxu0  ;;  %v979_v46 = vpop.f32.mrf.mxu1 }
 0x104   : > { %776 = vst.msk [vmem:[%s1264_s9] sm:$0xff] %vm344_vm0, %v768_v42  ;;  %v771_v47 = vadd.f32 %v903_v30, %v757_v43  ;;  %v756_v48 = vadd.f32 %v725_v45, %v575_v44  ;;  %v590_v49 = vadd.f32 %v979_v46, %v959_v20 }
 0x105   : > { %v999_v50 = vpop.f32.mrf.mxu0  ;;  %v584_v51 = vpop.f32.mrf.mxu1 }
 0x106   : > { %779 = vst.msk [vmem:[%s1264_s9 + $0x18] sm:$0xff] %vm344_vm0, %v771_v47  ;;  %v770_v52 = vadd.f32 %v903_v30, %v756_v48  ;;  %v759_v53 = vadd.f32 %v999_v50, %v590_v49  ;;  %v585_v54 = vadd.f32 %v584_v51, %v455_v22 }
 0x107   : > { %v735_v55 = vpop.f32.mrf.mxu0  ;;  %v982_v56 = vpop.f32.mrf.mxu1 }
 0x108   : > { %778 = vst.msk [vmem:[%s1264_s9 + $0x10] sm:$0xff] %vm344_vm0, %v770_v52  ;;  %v773_v57 = vadd.f32 %v903_v30, %v759_v53  ;;  %v758_v58 = vadd.f32 %v735_v55, %v585_v54  ;;  %v600_v59 = vadd.f32 %v982_v56, %v962_v24 }
 0x109   : > { %v1002_v60 = vpop.f32.mrf.mxu0  ;;  %v594_v61 = vpop.f32.mrf.mxu1 }
 0x10a   : > { %781 = vst.msk [vmem:[%s1264_s9 + $0x28] sm:$0xff] %vm344_vm0, %v773_v57  ;;  %v772_v62 = vadd.f32 %v903_v30, %v758_v58  ;;  %v761_v63 = vadd.f32 %v1002_v60, %v600_v59  ;;  %v595_v0 = vadd.f32 %v594_v61, %v465_v26 }
 0x10b   : > { %v745_v1 = vpop.f32.mrf.mxu0 }
 0x10c   : > { %780 = vst.msk [vmem:[%s1264_s9 + $0x20] sm:$0xff] %vm344_vm0, %v772_v62  ;;  %v775_v2 = vadd.f32 %v903_v30, %v761_v63  ;;  %v760_v3 = vadd.f32 %v745_v1, %v595_v0 }
 0x10e   : > { %783 = vst.msk [vmem:[%s1264_s9 + $0x38] sm:$0xff] %vm344_vm0, %v775_v2  ;;  %v774_v4 = vadd.f32 %v903_v30, %v760_v3 }
 0x110   : > { %782 = vst.msk [vmem:[%s1264_s9 + $0x30] sm:$0xff] %vm344_vm0, %v774_v4 }
 0x111 PF: > { %p10_p9 = scmp.ge.s32.totalorder %s1098_s16, 4   ;;  %s1296_s12 = smov %s1055_s13 }
 0x112   : > { %s1297_s13 = smov %s1107_s19  ;;  %s1298_s14 = smov %s1098_s16 }
 0x113   :  { %12 = sbr.rel (!%p10_p9) target bundleno = 2 (0x2), region = 109 }

</bundles_post_ra>
